<compile_context>
chip_gen: v6e
topology: v6e:2x2x1
jax: 0.10.0
libtpu: 0.0.40
codegen_flags: <defaults>
</compile_context>

<pallas_src>
import functools

import jax
import jax.numpy as jnp
from jax.experimental import pallas as pl
from jax.experimental.pallas import tpu as pltpu


def _l2softmax_partial_kernel(x_ref, partial_ref, *, total_rows, compute_dtype,
                              use_mxu_rowsum):
    tb, c = x_ref.shape
    x = x_ref[...].astype(compute_dtype)                         # (TB, C)

    # Mask rows of the (possibly ragged) last batch tile.
    row = jax.lax.broadcasted_iota(jnp.int32, (tb, 1), 0) + pl.program_id(0) * tb
    valid = row < total_rows                                      # (TB, 1)

    # Numerically stable softmax statistics along the class axis (PyTorch dim=1).
    m = jnp.max(x, axis=-1, keepdims=True)                        # (TB, 1)  XLU
    e = jnp.exp(x - m)                                            # (TB, C)  EUP, e in [0,1]
    e2 = e * e                                                    # (TB, C)  VPU

    if use_mxu_rowsum:
        # Row sums on the otherwise-idle MXU (f32 accumulation); only the row-max stays
        # on the XLU.  Applied on the bf16 compute path (v6e / v7x).
        ones = jnp.ones((c, 128), dtype=compute_dtype)
        s = jnp.dot(e, ones, preferred_element_type=jnp.float32)[:, :1]     # (TB, 1)
        s2 = jnp.dot(e2, ones, preferred_element_type=jnp.float32)[:, :1]   # (TB, 1)
    else:
        s = jnp.sum(e.astype(jnp.float32), axis=-1, keepdims=True)          # (TB, 1)
        s2 = jnp.sum(e2.astype(jnp.float32), axis=-1, keepdims=True)        # (TB, 1)

    # sum_j p_ij^2 = (sum_j e_ij^2) / (sum_j e_ij)^2  -- per-row (TB,1) math only.
    inv_s = pl.reciprocal(s, approx=True)                          # EUP vrcp (free slot)
    row_p2 = jnp.where(valid, s2 * (inv_s * inv_s), 0.0)           # (TB, 1)

    # Lane-dense per-tile partial: one private (8,128) block per grid step (no carry,
    # so the grid axis stays "parallel" across TensorCores).
    partial_ref[...] = jnp.full(partial_ref.shape, jnp.sum(row_p2), dtype=jnp.float32)


def _device_kind():
    try:
        return jax.devices()[0].device_kind.lower()
    except Exception:
        return ""


def _vmem_capacity_bytes():
    try:
        return int(pltpu.get_tpu_info().vmem_capacity_bytes)
    except Exception:
        return 64 * 1024 * 1024           # conservative default (v7x-sized VMEM)


_MAX_TILE_ROWS = 16384                    # sanity cap only (was 1024; raised per review)


def _pick_tiling(n_rows, n_cols, in_itemsize, compute_itemsize):
    """Generation-aware (tile_rows, vmem_limit_bytes)."""
    cap = _vmem_capacity_bytes()
    if cap >= 96 * 1024 * 1024:           # v5e / v6e: 128 MiB physical VMEM
        vmem_limit = 96 * 1024 * 1024
    else:                                 # v7x: 64 MiB physical (32 MiB scoped default)
        vmem_limit = 48 * 1024 * 1024
    usable = vmem_limit - 8 * 1024 * 1024  # headroom for output blocks / misc scratch

    # Per-row VMEM cost: double-buffered input block + ~3 full-tile compute
    # intermediates (cast, e, e*e) in the compute dtype.
    bytes_per_row = n_cols * (2 * in_itemsize + 3 * compute_itemsize)
    tb = usable // max(bytes_per_row, 1)
    tb = int(min(tb, _MAX_TILE_ROWS, n_rows))
    if tb < n_rows:                        # tiled: keep the (8,128) sublane constraint
        tb = max(8, tb - tb % 8)
    return tb, vmem_limit


def l2softmax_loss(x, *, tile_batch=None, input_buffer_count=2):
    """x: [B, C] float array (softmax over dim 1). Returns scalar float32 MSE loss."""
    B, C = x.shape
    kind = _device_kind()
    # bf16 VPU/EUP (and the MXU row-sum offload) only on v6e / v7x; v5e and older stay f32.
    bf16_compute = (x.dtype == jnp.bfloat16) and any(g in kind for g in ("v6", "v7"))
    compute_dtype = jnp.bfloat16 if bf16_compute else jnp.float32
    use_mxu_rowsum = bf16_compute
    # TODO(synk): on v7x with f32 inputs the XLU row sums can still bind; extend the MXU
    # offload to the f32 path (HIGHEST precision) after validating accuracy there.

    auto_tb, vmem_limit = _pick_tiling(B, C, x.dtype.itemsize,
                                       jnp.dtype(compute_dtype).itemsize)
    tb = int(min(tile_batch, B)) if tile_batch is not None else auto_tb
    num_tiles = pl.cdiv(B, tb)

    kernel = functools.partial(_l2softmax_partial_kernel, total_rows=B,
                               compute_dtype=compute_dtype,
                               use_mxu_rowsum=use_mxu_rowsum)

    # Deeper input buffering can be swept (input_buffer_count=3) when tiles stay tiny.
    in_spec = pl.BlockSpec((tb, C), lambda i: (i, 0))
    if input_buffer_count != 2:
        try:
            in_spec = pl.BlockSpec((tb, C), lambda i: (i, 0),
                                   pipeline_mode=pl.Buffered(input_buffer_count))
        except TypeError:
            pass  # older jax without pipeline_mode: keep default double buffering

    # TODO(synk): for vocab-scale C where even an 8-row (8, C) tile overflows VMEM, add a
    # second grid axis over C with an online-softmax (running max / rescaled sums).
    partials = pl.pallas_call(
        kernel,
        out_shape=jax.ShapeDtypeStruct((num_tiles, 8, 128), jnp.float32),
        grid=(num_tiles,),
        in_specs=[in_spec],
        out_specs=pl.BlockSpec((1, 8, 128), lambda i: (i, 0, 0)),
        compiler_params=pltpu.CompilerParams(
            dimension_semantics=("parallel",),
            vmem_limit_bytes=vmem_limit,
        ),
    )(x)

    # Every element of a partial block is the same splat -> one dense reduction.
    sum_p2 = jnp.sum(partials) * jnp.float32(1.0 / (8 * 128))
    inv_c = jnp.float32(1.0 / C)
    # mean((p - 1/C)^2) = mean(p^2) - 1/C^2  because mean(p) == 1/C exactly.
    # Clamp guards the tiny negative the cancellation can produce when loss ~ 0.
    return jnp.maximum(sum_p2 / jnp.float32(B * C) - inv_c * inv_c, 0.0)


def _reference(x):
    out = jax.nn.softmax(x.astype(jnp.float32), axis=1)
    tgt = jnp.full_like(out, 1.0 / x.shape[1])
    return jnp.mean((out - tgt) ** 2)


if __name__ == "__main__":
    key = jax.random.PRNGKey(0)

    # Small but grid-exercising shape: four 16-row batch tiles, the last one ragged.
    B, C = 50, 128
    x = jax.random.normal(key, (B, C), dtype=jnp.float32)
    ref = _reference(x)

    # Explicit small tile -> multi-step grid + ragged-tile masking path.
    loss = jax.jit(functools.partial(l2softmax_loss, tile_batch=16))(x)
    loss = jax.block_until_ready(loss)
    assert jnp.allclose(loss, ref, rtol=5e-3, atol=1e-7), (loss, ref)

    # Default auto-tiled path (generation-aware VMEM budget picks the tile).
    loss_auto = jax.block_until_ready(jax.jit(l2softmax_loss)(x))
    assert jnp.allclose(loss_auto, ref, rtol=5e-3, atol=1e-7), (loss_auto, ref)

    # bf16 input stays bf16 through the HBM->VMEM DMA (half the bytes read); on v6e/v7x
    # this also exercises the bf16 compute + MXU row-sum path.
    xb = x.astype(jnp.bfloat16)
    loss_b = jax.block_until_ready(jax.jit(l2softmax_loss)(xb))
    ref_b = _reference(xb)
    assert jnp.allclose(loss_b, ref_b, rtol=5e-2, atol=1e-6), (loss_b, ref_b)

    print("KERNEL_OK")
</pallas_src>

<mosaic_0001>
module attributes {stable_mosaic.version = 11 : i64} {
  func.func @_l2softmax_partial_kernel(%arg0: i32, %arg1: memref<16x128xf32, #tpu.memory_space<vmem>>, %arg2: memref<1x8x128xf32, #tpu.memory_space<vmem>>) attributes {dimension_semantics = [#tpu.dimension_semantics<parallel>], iteration_bounds = array<i64: 4>, scalar_prefetch = 0 : i64, scratch_operands = 0 : i64, tpu.core_type = #tpu.core_type<tc>, window_params = [{transform_indices = @transform_0, window_bounds = array<i64: 16, 128>}, {transform_indices = @transform_1, window_bounds = array<i64: 1, 8, 128>}]} {
    %c0 = arith.constant 0 : index
    %c0_0 = arith.constant 0 : index
    %0 = vector.load %arg1[%c0, %c0_0] : memref<16x128xf32, #tpu.memory_space<vmem>>, vector<16x128xf32>
    %1 = tpu.iota {dimensions = array<i32: 0>} : vector<16x1xi32>
    %c16_i32 = arith.constant 16 : i32
    %2 = arith.muli %arg0, %c16_i32 : i32
    %3 = vector.broadcast %2 : i32 to vector<16x1xi32>
    %4 = arith.addi %1, %3 : vector<16x1xi32>
    %c50_i32 = arith.constant 50 : i32
    %5 = vector.broadcast %c50_i32 : i32 to vector<16x1xi32>
    %6 = arith.cmpi slt, %4, %5 : vector<16x1xi32>
    %cst = arith.constant dense<0xFF800000> : vector<16xf32>
    %7 = vector.multi_reduction <maximumf>, %0, %cst [1] : vector<16x128xf32> to vector<16xf32>
    %8 = vector.shape_cast %7 : vector<16xf32> to vector<16x1xf32>
    %9 = vector.broadcast %8 : vector<16x1xf32> to vector<16x128xf32>
    %10 = arith.subf %0, %9 : vector<16x128xf32>
    %11 = math.exp %10 : vector<16x128xf32>
    %12 = arith.mulf %11, %11 : vector<16x128xf32>
    %cst_1 = arith.constant dense<0.000000e+00> : vector<16xf32>
    %13 = vector.multi_reduction <add>, %11, %cst_1 [1] : vector<16x128xf32> to vector<16xf32>
    %14 = vector.shape_cast %13 : vector<16xf32> to vector<16x1xf32>
    %cst_2 = arith.constant dense<0.000000e+00> : vector<16xf32>
    %15 = vector.multi_reduction <add>, %12, %cst_2 [1] : vector<16x128xf32> to vector<16xf32>
    %16 = vector.shape_cast %15 : vector<16xf32> to vector<16x1xf32>
    %17 = tpu.reciprocal %14 {approx = true} : vector<16x1xf32> -> vector<16x1xf32>
    %18 = arith.mulf %17, %17 : vector<16x1xf32>
    %19 = arith.mulf %16, %18 : vector<16x1xf32>
    %cst_3 = arith.constant 0.000000e+00 : f32
    %20 = vector.broadcast %cst_3 : f32 to vector<16x1xf32>
    %21 = arith.select %6, %19, %20 : vector<16x1xi1>, vector<16x1xf32>
    %22 = vector.shape_cast %21 : vector<16x1xf32> to vector<1x16x1xf32>
    %cst_4 = arith.constant dense<0.000000e+00> : vector<1xf32>
    %23 = vector.multi_reduction <add>, %22, %cst_4 [1, 2] : vector<1x16x1xf32> to vector<1xf32>
    %24 = vector.shape_cast %23 : vector<1xf32> to vector<1x1x1xf32>
    %25 = vector.extract %24[0, 0, 0] : f32 from vector<1x1x1xf32>
    %26 = vector.broadcast %25 : f32 to vector<1x8x128xf32>
    %c0_5 = arith.constant 0 : index
    %c0_6 = arith.constant 0 : index
    %c0_7 = arith.constant 0 : index
    %27 = vector.load %arg2[%c0_5, %c0_6, %c0_7] : memref<1x8x128xf32, #tpu.memory_space<vmem>>, vector<1x8x128xf32>
    tpu.vector_store %arg2[%c0_5, %c0_6, %c0_7], %26 {strides = array<i32>} : memref<1x8x128xf32, #tpu.memory_space<vmem>>, vector<1x8x128xf32>,
    return
  }
  func.func @transform_0(%arg0: i32) -> (i32, i32) {
    %c0_i32 = arith.constant 0 : i32
    %c0_i32_0 = arith.constant 0 : i32
    return %arg0, %c0_i32 : i32, i32
  }
  func.func @transform_1(%arg0: i32) -> (i32, i32, i32) {
    %c0_i32 = arith.constant 0 : i32
    %c0_i32_0 = arith.constant 0 : i32
    %c0_i32_1 = arith.constant 0 : i32
    return %arg0, %c0_i32, %c0_i32_0 : i32, i32, i32
  }
}

</mosaic_0001>

<bundles_post_ra>
// kernel: l2softmax_loss.1
= control target key start
LH: loop header
LB: loop body
LE: loop exit
PB: predicated region body
PF: predicated region fallthrough
CT: control target
= control target key end

     0   :  { %6 = vsyncpa [#allocation3], 0  ;;  %s509_s0 = inlined_call_operand.hbm [shape: f32[50,128], index: 0, kind: input, shape index: {}]   ;;  %s510_s1 = inlined_call_operand.vmem [shape: f32[4,8,128], index: 1, kind: output, shape index: {}]  }
   0x1   :  { %8 = vsyncpa [#allocation3 + $0x1], 0  ;;  %s402_s6 = smov 0   ;;  %s404_s7 = smov 0  }
   0x2   :  { %s406_s8 = smov 0   ;;  %s408_s9 = smov 0  }
   0x3 LB: > { %s421_s10 = sadd.s32 4294967295, %s387_s9   ;;  %s424_s11 = sadd.s32 1, %s387_s9   ;;  %s387_s9 = sphi %s408_s9, %s515_s9   ;;  %s383_s8 = sphi %s406_s8, %s514_s8   ;;  %s379_s7 = sphi %s404_s7, %s513_s7   ;;  %s375_s6 = sphi %s402_s6, %s512_s6  }
   0x4   : > { %s18_s12 = ssub.s32 %s387_s9, %s424_s11  ;;  %s21_s13 = sadd.s32 1, %s383_s8 }
   0x5   : > { %p19_p0 = scmp.eq.s32.totalorder %s18_s12, 0  ;;  %p28_p1 = scmp.ne.s32.totalorder %s383_s8, %s379_s7 }
   0x6   : > { %p29_p2 = scmp.eq.s32.totalorder %s387_s9, 0  ;;  %p34_p3 = scmp.ne.s32.totalorder %s379_s7, %s375_s6 }
   0x7   : > { %s434_s14 = scalar_select %p19_p0, %s383_s8, %s21_s13  }
   0x8   : > { %p30_p4 = por %p29_p2, %p28_p1  ;;  %p35_p5 = scmp.eq.s32.totalorder %s421_s10, 0 }
   0x9   : > { %p267_p7 = scmp.ge.s32.totalorder %s387_s9, 4 }
   0xa   : > { %p437_p6 = por %p35_p5, %p34_p3 }
   0xb   : > { %80 = sbr.rel (%p267_p7) target bundleno = 48 (0x30), region = 16 }
  0x10   : > { %83 = sbr.rel (!%p30_p4) target bundleno = 48 (0x30), region = 20  ;;  %s84_s16 = sand.u32 (%p30_p4), 1, %s383_s8  }
  0x11   : > { %s269_s17 = sshll.u32 (%p30_p4), %s387_s9, 1  ;;  %s268_s18 = sshll.u32 (%p30_p4), %s84_s16, 4 }
  0x12   : > { %s90_s19 = ssub.s32 (%p30_p4), 7, %s269_s17  ;;  %s447_s22 = scalar_lea.sflag (%p30_p4), [#allocation3], %s84_s16 }
  0x13   : > { %p91_p8 = scmp.lt.s32.totalorder (%p30_p4), %s90_s19, 2  ;;  %s88_s23 = scalar_lea.vmem (%p30_p4), [#allocation2], %s268_s18 }
  0x15   : > { %s517_s19 = smov (!%p91_p8, %s90_s19), 2 }
  0x16   : > { %s444_s20 = sshll.u32 %s517_s19, 7 }
  0x17   : > { %s95_s21 = ssub.s32 256, %s444_s20 }
  0x18   : > { %96 = vsyncadd %s447_s22, %s95_s21  ;;  %p271_p9 = scmp.ne.s32.totalorder %s444_s20, 0  ;;  %s281_s24 = sshll.u32 %s387_s9, 8 }
  0x19   : > { %s455_s27 = scalar_lea.hbm %s509_s0, %s281_s24  ;;  %s101_s28 = sshll.u32 %s88_s23, 4  ;;  %s457_s28 = int_to_ptr.vmem [resolvable:$true] %s101_s28 }
  0x1a   : > { %s327_s29 = scalar_lea.hbm %s455_s27, %s444_s20  ;;  %s331_s3 = scalar_lea.hbm %s509_s0, 896 }
  0x1b   : > { %p328_p10 = scmp.ne.s32.totalorder %s455_s27, %s327_s29  ;;  %p332_p13 = scmp.lt.s32.totalorder %s455_s27, %s509_s0 }
  0x1c   : > { %p333_p0 = scmp.lt.s32.totalorder %s331_s3, %s327_s29 }
  0x1d   : > { %p329_p11 = pnand %p328_p10, %p271_p9 }
  0x1e   : > { %p334_p1 = por %p333_p0, %p332_p13 }
  0x1f   : > { %p330_p12 = pneg %p329_p11 }
  0x21   : > { %p335_p2 = pnand %p334_p1, %p330_p12 }
  0x23   : > { %338 = shalt.err (!%p335_p2)
}
  0x24   : > { %s339_s6 = scalar_lea.vmem %s457_s28, %s444_s20  ;;  %s389_s12 = smov [#allocation2]  }
  0x25   : > { %p340_p3 = scmp.ne.s32.totalorder %s457_s28, %s339_s6  ;;  %s343_s13 = sshll.u32 %s389_s12, 4  ;;  %s344_s13 = int_to_ptr.vmem [resolvable:$false] %s343_s13 }
  0x26   : > { %s345_s16 = scalar_lea.vmem %s344_s13, 512  ;;  %p346_p7 = scmp.lt.s32.totalorder %s457_s28, %s344_s13 }
  0x27   : > { %p341_p4 = pnand %p340_p3, %p271_p9  ;;  %p347_p8 = scmp.lt.s32.totalorder %s345_s16, %s339_s6 }
  0x29   : > { %p342_p5 = pneg %p341_p4  ;;  %p348_p10 = por %p347_p8, %p346_p7 }
  0x2b   : > { %p349_p11 = pnand %p348_p10, %p342_p5 }
  0x2d   : > { %352 = shalt.err (!%p349_p11)
}
  0x2e   : > { %s390_s17 = smov 128   ;;  %s391_s18 = smov 8  }
  0x2f   : > { %107 = dma.hbm_to_vmem [thread:$0]  (%p271_p9), %s455_s27, %s444_s20, %s457_s28, %s447_s22, %s390_s17, %s390_s17, %s391_s18  }
  0x30 PF: > { %p275_p12 = scmp.ge.s32.totalorder %s387_s9, 1  ;;  %p109_p13 = scmp.lt.s32.totalorder %s387_s9, 5 }
  0x32   : > { %p110_p0 = pnand %p275_p12, %p109_p13 }
  0x33   : > { %s115_s19 = sand.u32 (!%p110_p0), 1, %s379_s7  }
  0x34   : > { %113 = sbr.rel (%p110_p0) target bundleno = 581 (0x245), region = 24  ;;  %s276_s21 = sshll.u32 (!%p110_p0), %s115_s19, 4 }
  0x35   : > { %s116_s23 = scalar_lea.sflag (!%p110_p0), [#allocation3], %s115_s19  ;;  %s119_s24 = scalar_lea.vmem (!%p110_p0), [#allocation2], %s276_s21 }
  0x39   : > { %370 = dma.done.wait (%p437_p6), %s116_s23, 256  }
  0x3a   : > { %372 = vsyncadd (%p437_p6), %s116_s23, 4294967040  ;;  %v146_v0 = vld [vmem:[%s119_s24] sm:$0xff]  ;;  %v147_v1 = vld [vmem:[%s119_s24 + $0x8] sm:$0xff]  ;;  %v148_v14 = vlaneseq  ;;  %s278_s9 = sshll.u32 %s421_s10, 4  ;;  %vm185_vm2 = vcmask 7168   ;;  %p142_p6 = scmp.lt.s32.totalorder %s421_s10, 3 }
  0x3b   : > { %157 = vmax.xlane.f32.xlu0 %v146_v0  ;;  %v152_v16 = vstv %s278_s9 }
  0x3c   : > { %v149_v15 = vshrl.u32 %v148_v14, 7  ;;  %s519_s10 = smov (!%p142_p6, %s421_s10), 3 }
  0x3d   : > { %s277_s15 = sshll.u32 %s519_s10, 3 }
  0x3e   : > { %v150_v17 = vadd.s32 8, %v149_v15  ;;  %v153_v19 = vadd.s32 %v152_v16, %v149_v15  ;;  %s145_s25 = scalar_lea.vmem %s510_s1, %s277_s15 }
  0x3f   : > { %159 = vmax.xlane.f32.xlu0 %v147_v1 }
  0x40   : > { %v154_v22 = vadd.s32 %v152_v16, %v150_v17  ;;  %vm155_vm0 = vcmp.lt.s32.totalorder %v153_v19, 50 }
  0x42   : > { %vm156_vm1 = vcmp.lt.s32.totalorder %v154_v22, 50 }
  0xc4   : > { %v158_v2 = vpop.xlane.xlu0 %157 }
  0xc5   : > { %v161_v3 = vsub.f32 %v146_v0, %v158_v2 }
  0xc7   : > { %v163_v4 = vmul.f32 1.442695, %v161_v3 }
  0xc8   : > { %v160_v5 = vpop.xlane.xlu0 %159 }
  0xc9   : > { %319 = vpow2.f32 %v163_v4  ;;  %v162_v6 = vsub.f32 %v147_v1, %v160_v5 }
  0xcb   : > { %v165_v7 = vmul.f32 1.442695, %v162_v6 }
  0xcd   : > { %321 = vpow2.f32 %v165_v7 }
  0xd6   : > { %v320_v8 = vpop.eup %319 }
  0xd7   : > { %169 = vadd.xlane.f32.xlu1 %v320_v8  ;;  %v167_v9 = vmul.f32 %v320_v8, %v320_v8 }
  0xd9   : > { %173 = vadd.xlane.f32.xlu0 %v167_v9 }
  0xda   : > { %v322_v10 = vpop.eup %321 }
  0xdb   : > { %171 = vadd.xlane.f32.xlu1 %v322_v10  ;;  %v168_v11 = vmul.f32 %v322_v10, %v322_v10 }
  0xdf   : > { %175 = vadd.xlane.f32.xlu1 %v168_v11 }
 0x160   : > { %v170_v12 = vpop.xlane.xlu1 %169 }
 0x161   : > { %323 = vrcp.f32 %v170_v12 }
 0x162   : > { %v174_v21 = vpop.xlane.xlu0 %173 }
 0x164   : > { %v172_v13 = vpop.xlane.xlu1 %171 }
 0x165   : > { %325 = vrcp.f32 %v172_v13 }
 0x168   : > { %v176_v26 = vpop.xlane.xlu1 %175 }
 0x16e   : > { %v324_v18 = vpop.eup %323 }
 0x16f   : > { %v179_v20 = vmul.f32 %v324_v18, %v324_v18 }
 0x171   : > { %v181_v23 = vmul.f32 %v179_v20, %v174_v21 }
 0x172   : > { %v326_v24 = vpop.eup %325 }
 0x173   : > { %v180_v25 = vmul.f32 %v326_v24, %v326_v24  ;;  %v183_v27 = vsel %vm155_vm0, %v181_v23, 0.0 }
 0x174   : > { %v186_v30 = vsel %vm185_vm2, %v183_v27, 0.0 }
 0x175   : > { %v182_v28 = vmul.f32 %v180_v25, %v176_v26 }
 0x177   : > { %v184_v29 = vsel %vm156_vm1, %v182_v28, 0.0 }
 0x178   : > { %v187_v31 = vsel %vm185_vm2, %v184_v29, 0.0 }
 0x179   : > { %v188_v32 = vadd.f32 %v187_v31, %v186_v30 }
 0x17b   : > { %189 = vadd.xlane.f32.xlu0 %v188_v32 }
 0x204   : > { %v190_v33 = vpop.xlane.xlu0 %189 }
 0x205   : > { %v191_v34 = vrot.slane %v190_v33, 4 }
 0x207   : > { %v192_v35 = vadd.f32 %v191_v34, %v190_v33 }
 0x209   : > { %v193_v36 = vrot.slane %v192_v35, 2 }
 0x20b   : > { %v194_v37 = vadd.f32 %v193_v36, %v192_v35 }
 0x20d   : > { %v195_v38 = vrot.slane %v194_v37, 1 }
 0x20f   : > { %v196_v39 = vadd.f32 %v195_v38, %v194_v37 }
 0x211   : > { %282 = vpush %v196_v39 }
 0x242   : > { %s283_s26 = spop %282 }
 0x243   : > { %v198_v40 = vstv %s283_s26 }
 0x244   : > { %199 = vst [vmem:[%s145_s25] sm:$0xff] %v198_v40 }
 0x245 PF: > { %p11_p9 = scmp.ge.s32.totalorder %s424_s11, 6   ;;  %s512_s6 = smov %s379_s7 }
 0x246   : > { %s513_s7 = smov %s383_s8  ;;  %s514_s8 = smov %s434_s14 }
 0x247   : > { %s515_s9 = smov %s424_s11  ;;  %13 = sbr.rel (!%p11_p9) target bundleno = 3 (0x3), region = 64 }
 0x24c   :  { %219 = vsyncpa [#allocation3], 1 }
 0x24d   :  { %221 = vsyncpa [#allocation3 + $0x1], 1 }

</bundles_post_ra>
